<compile_context>
chip_gen: v5e
topology: v5e:2x2
jax: 0.10.0
libtpu: 0.0.40
codegen_flags: <defaults>
</compile_context>

<pallas_src>
import jax
import jax.numpy as jnp
from jax.experimental import pallas as pl
from jax.experimental.pallas import tpu as pltpu


def _hardswish_kernel(x_ref, o_ref):
    # One lane-dense (TM, LANES) tile: hardswish = x * relu6(x + 3) / 6.
    # clip() lowers to VPU min/max; multiply by 1/6 instead of dividing.
    x = x_ref[...]
    o_ref[...] = x * jnp.clip(x + 3.0, 0.0, 6.0) * (1.0 / 6.0)


def _round_up(a, b):
    return -(-a // b) * b


def hardswish(x, *, lanes=512, max_block_rows=1024):
    """Forward pass of _Hardswish for an arbitrary-shaped tensor.

    The tensor is flattened, zero-padded to a (rows_p, lanes) slab (hardswish(0) == 0,
    and the padding is sliced off anyway), processed by a row-tiled Pallas kernel, and
    reshaped back to the original shape/dtype.
    """
    orig_shape = x.shape
    orig_dtype = x.dtype
    n = x.size

    flat = x.reshape(-1)
    rows = max(1, -(-n // lanes))

    # Row tile: multiple of 8 sublanes; capped so double-buffered in+out tiles stay
    # far inside scoped VMEM on every generation (v5e 16 MiB default, v7x 64 MiB phys).
    # TM=1024, lanes=512, f32: 2 MiB/buffer * 2 buffers * (in+out) = 8 MiB.
    tm = min(_round_up(max_block_rows, 8), _round_up(rows, 8))
    rows_p = _round_up(rows, tm)

    pad = rows_p * lanes - n
    if pad:
        flat = jnp.pad(flat, (0, pad))
    x2d = flat.reshape(rows_p, lanes)

    out2d = pl.pallas_call(
        _hardswish_kernel,
        out_shape=jax.ShapeDtypeStruct((rows_p, lanes), orig_dtype),
        grid_spec=pltpu.PrefetchScalarGridSpec(
            num_scalar_prefetch=0,
            grid=(rows_p // tm,),
            in_specs=[pl.BlockSpec((tm, lanes), lambda i: (i, 0))],
            out_specs=pl.BlockSpec((tm, lanes), lambda i: (i, 0)),
        ),
        compiler_params=pltpu.CompilerParams(
            dimension_semantics=("parallel",),   # shard row tiles across TCs (v7x)
            vmem_limit_bytes=64 * 1024 * 1024,
        ),
    )(x2d)

    return out2d.reshape(-1)[:n].reshape(orig_shape)


def _reference(x):
    return x * jnp.clip(x + 3.0, 0.0, 6.0) / 6.0


if __name__ == "__main__":
    key = jax.random.PRNGKey(0)
    k0, k1, k2 = jax.random.split(key, 3)

    # Small shape consistent with the module's use inside PPLCNet blocks.
    x = jax.random.normal(k0, (2, 4, 16, 16), dtype=jnp.float32) * 4.0
    out = jax.block_until_ready(hardswish(x))
    ref = _reference(x)
    assert out.shape == x.shape
    assert jnp.allclose(out, ref, atol=1e-6, rtol=1e-6), "mismatch vs reference (small)"

    # Shape whose element count is not a multiple of the lane width -> exercises the
    # pad / slice path.
    x_odd = jax.random.normal(k1, (3, 13, 17, 5), dtype=jnp.float32) * 4.0
    out_odd = jax.block_until_ready(hardswish(x_odd))
    assert out_odd.shape == x_odd.shape
    assert jnp.allclose(out_odd, _reference(x_odd), atol=1e-6, rtol=1e-6), \
        "mismatch vs reference (odd shape)"

    # Larger tensor -> multi-tile grid, exercises the double-buffered pipeline and the
    # "parallel" grid axis.
    x_big = jax.random.normal(k2, (8, 32, 64, 64), dtype=jnp.float32) * 4.0
    out_big = jax.block_until_ready(hardswish(x_big))
    assert out_big.shape == x_big.shape
    assert jnp.allclose(out_big, _reference(x_big), atol=1e-6, rtol=1e-6), \
        "mismatch vs reference (big)"

    print("KERNEL_OK")
</pallas_src>

<mosaic_0001>
module attributes {stable_mosaic.version = 11 : i64} {
  func.func @_hardswish_kernel(%arg0: i32, %arg1: memref<8x512xf32, #tpu.memory_space<vmem>>, %arg2: memref<8x512xf32, #tpu.memory_space<vmem>>) attributes {dimension_semantics = [#tpu.dimension_semantics<parallel>], iteration_bounds = array<i64: 1>, scalar_prefetch = 0 : i64, scratch_operands = 0 : i64, tpu.core_type = #tpu.core_type<tc>, window_params = [{transform_indices = @transform_0, window_bounds = array<i64: 8, 512>}, {transform_indices = @transform_1, window_bounds = array<i64: 8, 512>}]} {
    %c0 = arith.constant 0 : index
    %c0_0 = arith.constant 0 : index
    %0 = vector.load %arg1[%c0, %c0_0] : memref<8x512xf32, #tpu.memory_space<vmem>>, vector<8x512xf32>
    %cst = arith.constant 3.000000e+00 : f32
    %1 = vector.broadcast %cst : f32 to vector<8x512xf32>
    %2 = arith.addf %0, %1 : vector<8x512xf32>
    %cst_1 = arith.constant 0.000000e+00 : f32
    %cst_2 = arith.constant 6.000000e+00 : f32
    %3 = vector.broadcast %cst_1 : f32 to vector<8x512xf32>
    %4 = arith.maximumf %3, %2 : vector<8x512xf32>
    %5 = vector.broadcast %cst_2 : f32 to vector<8x512xf32>
    %6 = arith.minimumf %5, %4 : vector<8x512xf32>
    %7 = arith.mulf %0, %6 : vector<8x512xf32>
    %cst_3 = arith.constant 0.166666672 : f32
    %8 = vector.broadcast %cst_3 : f32 to vector<8x512xf32>
    %9 = arith.mulf %7, %8 : vector<8x512xf32>
    %c0_4 = arith.constant 0 : index
    %c0_5 = arith.constant 0 : index
    %10 = vector.load %arg2[%c0_4, %c0_5] : memref<8x512xf32, #tpu.memory_space<vmem>>, vector<8x512xf32>
    tpu.vector_store %arg2[%c0_4, %c0_5], %9 {strides = array<i32>} : memref<8x512xf32, #tpu.memory_space<vmem>>, vector<8x512xf32>,
    return
  }
  func.func @transform_0(%arg0: i32) -> (i32, i32) {
    %c0_i32 = arith.constant 0 : i32
    %c0_i32_0 = arith.constant 0 : i32
    return %arg0, %c0_i32 : i32, i32
  }
  func.func @transform_1(%arg0: i32) -> (i32, i32) {
    %c0_i32 = arith.constant 0 : i32
    %c0_i32_0 = arith.constant 0 : i32
    return %arg0, %c0_i32 : i32, i32
  }
}

</mosaic_0001>

<bundles_post_ra>
// kernel: tpu_custom_call.1
= control target key start
LH: loop header
LB: loop body
LE: loop exit
PB: predicated region body
PF: predicated region fallthrough
CT: control target
= control target key end

     0   :  { %6 = vsyncpa [#allocation3], 0  ;;  %s140_s0 = inlined_call_operand.hbm [shape: f32[8,512], index: 0, kind: input, shape index: {}]   ;;  %s141_s1 = inlined_call_operand.hbm [shape: f32[8,512], index: 1, kind: output, shape index: {}]  }
   0x1   :  { %7 = vsyncpa [#allocation4], 0  ;;  %s13_s8 = sshll.u32 %s140_s0, 4  ;;  %s122_s9 = smov [#allocation2]   ;;  %s14_s8 = int_to_ptr.hbm [resolvable:$true] %s13_s8 }
   0x2   :  { %s15_s10 = sshll.u32 %s122_s9, 4  ;;  %s16_s10 = int_to_ptr.vmem [resolvable:$true] %s15_s10 }
   0x3   :  { %18 = dma.hbm_to_vmem [thread:$0]  %s14_s8, 512, %s16_s10, [#allocation3]  }
   0x4   :  { %118 = dma.done.wait [#allocation3], 512  }
   0x5   :  { %119 = vsyncadd [#allocation3], 4294966784  ;;  %v23_v0 = vld [vmem:[#allocation2] sm:$0xff]  ;;  %v24_v1 = vld [vmem:[#allocation2 + $0x8] sm:$0xff]  ;;  %s123_s0 = smov [#allocation5]   ;;  %s58_s14 = sshll.u32 %s141_s1, 4  ;;  %s59_s14 = int_to_ptr.hbm [resolvable:$true] %s58_s14 }
   0x6   :  { %v25_v2 = vld [vmem:[#allocation2 + $0x10] sm:$0xff]  ;;  %v27_v3 = vadd.f32 3.0, %v23_v0  ;;  %v28_v4 = vadd.f32 3.0, %v24_v1  ;;  %v26_v6 = vld [vmem:[#allocation2 + $0x18] sm:$0xff]  ;;  %s56_s11 = sshll.u32 %s123_s0, 4  ;;  %s57_s11 = int_to_ptr.vmem [resolvable:$true] %s56_s11 }
   0x7   :  { %v29_v5 = vadd.f32 3.0, %v25_v2  ;;  %v30_v7 = vadd.f32 3.0, %v26_v6 }
   0x8   :  { %v31_v8 = vmax.f32 %v27_v3, 0.0  ;;  %v32_v9 = vmax.f32 %v28_v4, 0.0 }
   0x9   :  { %v33_v10 = vmax.f32 %v29_v5, 0.0  ;;  %v34_v11 = vmax.f32 %v30_v7, 0.0 }
   0xa   :  { %v35_v12 = vmin.f32 %v31_v8, 6.0  ;;  %v36_v13 = vmin.f32 %v32_v9, 6.0 }
   0xb   :  { %v37_v14 = vmin.f32 %v33_v10, 6.0  ;;  %v38_v15 = vmin.f32 %v34_v11, 6.0 }
   0xc   :  { %v39_v16 = vmul.f32 %v35_v12, %v23_v0  ;;  %v40_v17 = vmul.f32 %v36_v13, %v24_v1 }
   0xd   :  { %v41_v18 = vmul.f32 %v37_v14, %v25_v2  ;;  %v42_v19 = vmul.f32 %v38_v15, %v26_v6 }
   0xe   :  { %v43_v20 = vmul.f32 0.16666667, %v39_v16  ;;  %v44_v21 = vmul.f32 0.16666667, %v40_v17 }
   0xf   :  { %v45_v22 = vmul.f32 0.16666667, %v41_v18  ;;  %v46_v23 = vmul.f32 0.16666667, %v42_v19 }
  0x10   :  { %47 = vst [vmem:[#allocation5] sm:$0xff] %v43_v20 }
  0x11   :  { %48 = vst [vmem:[#allocation5 + $0x8] sm:$0xff] %v44_v21 }
  0x12   :  { %49 = vst [vmem:[#allocation5 + $0x10] sm:$0xff] %v45_v22 }
  0x13   :  { %50 = vst [vmem:[#allocation5 + $0x18] sm:$0xff] %v46_v23 }
  0x14   :  { %61 = dma.vmem_to_hbm [thread:$0]  %s57_s11, 512, %s59_s14, [#allocation4]  }
  0x15   :  { %120 = dma.done.wait [#allocation4], 512  }
  0x16   :  { %121 = vsyncadd [#allocation4], 4294966784 }
  0x17   :  { %66 = vsyncpa [#allocation3], 1 }
  0x18   :  { %67 = vsyncpa [#allocation4], 1 }

</bundles_post_ra>
